<compile_context>
chip_gen: v6e
topology: v6e:2x2x1
jax: 0.10.0
libtpu: 0.0.40
codegen_flags: <defaults>
</compile_context>

<pallas_src>
import functools

import jax
import jax.numpy as jnp
from jax import lax
from jax.experimental import pallas as pl
from jax.experimental.pallas import tpu as pltpu

LANE = 128
SUBLANE = 8


def _round_up(n, m):
    return ((n + m - 1) // m) * m


def _pad_to(x, shape):
    pads = [(0, t - s) for s, t in zip(x.shape, shape)]
    if all(p == (0, 0) for p in pads):
        return x
    return jnp.pad(x, pads)


def _pick_tb(batch, max_tb=8):
    tb = max(1, min(max_tb, batch))
    # keep >= 2 steps on the parallel batch axis when possible (v7x: 2 TCs)
    while tb > 1 and -(-batch // tb) < 2:
        tb //= 2
    return max(tb, 1)


def _pick_hw_tile(hw, max_tile=2048):
    if hw <= max_tile:
        return hw
    start = max_tile - (max_tile % SUBLANE)
    for t in range(start, SUBLANE - 1, -SUBLANE):
        if hw % t == 0:
            return t
    return hw  # no clean divisor: fall back to a single big tile


def _vmem_limit_bytes(tb, hw_tile, kcp, cfp, wps, outp):
    est = 2 * tb * hw_tile * _round_up(kcp, LANE) * 2        # patches (bf16, 2 bufs)
    est += tb * hw_tile * cfp * 4                            # conv-tile intermediate
    est += 2 * kcp * cfp * 2 + 2 * SUBLANE * cfp * 4         # conv weight + bias
    for w in wps:
        est += 2 * w.shape[0] * w.shape[1] * 4 + 2 * SUBLANE * w.shape[1] * 4
    est += 2 * _round_up(tb, SUBLANE) * outp * 4             # output block
    est += _round_up(tb, SUBLANE) * cfp * 4                  # pool accumulator
    return int(min(max(32 << 20, 2 * est + (4 << 20)), 48 << 20))


# ------------------------ one-time parameter packing -------------------------
def prepare_params(conv_w_hwio, conv_b, weights, biases):
    """Init-time padding / bf16 casting of the frozen & fixed parameters."""
    KH, KW, Cin, Cf = conv_w_hwio.shape
    assert (KH, KW) == (3, 3)
    KC = KH * KW * Cin
    KCP = _round_up(KC, SUBLANE)          # sublane-clean K (zero rows are exact)
    CFP = _round_up(Cf, LANE)
    cw = _pad_to(conv_w_hwio.reshape(KC, Cf).astype(jnp.float32), (KCP, CFP))
    cw = cw.astype(jnp.bfloat16)          # frozen conv weight as bf16 MXU operand
    cb = _pad_to(conv_b.astype(jnp.float32).reshape(1, Cf), (1, CFP))
    wps, bps = [], []
    for w, b in zip(weights, biases):
        dinp = _round_up(w.shape[0], LANE)
        doutp = _round_up(w.shape[1], LANE)
        wps.append(_pad_to(w.astype(jnp.float32), (dinp, doutp)))
        bps.append(_pad_to(b.astype(jnp.float32).reshape(1, -1), (1, doutp)))
    return cw, cb, tuple(wps), tuple(bps)


# --------------------------- fused forward kernel ----------------------------
def _make_kernel(n_layers, tb, inv_hw):
    def kernel(patch_ref, cw_ref, cb_ref, *rest):
        wb_refs = rest[:2 * n_layers]
        out_ref = rest[2 * n_layers]
        acc_ref = rest[2 * n_layers + 1]

        @pl.when(pl.program_id(1) == 0)
        def _init():
            acc_ref[...] = jnp.zeros_like(acc_ref)

        # Conv tile: per batch element one (hw_tile, KCP)@(KCP, CFP) bf16 matmul
        # (f32 acc), bias + ReLU, then sum-reduce this HW tile into the pool
        # accumulator. The full (HW, CFP) activation is never materialised.
        sums = []
        for b in range(tb):
            y = jnp.dot(patch_ref[b], cw_ref[...],
                        preferred_element_type=jnp.float32)
            y = jnp.maximum(y + cb_ref[...], 0.0)
            sums.append(jnp.sum(y, axis=0, keepdims=True))
        acc_ref[...] += sums[0] if tb == 1 else jnp.concatenate(sums, axis=0)

        @pl.when(pl.program_id(1) == pl.num_programs(1) - 1)
        def _finalize():
            # global average pool; dropout treated as identity (eval mode)
            x = acc_ref[...] * inv_hw                     # (TB, CFP) f32
            for i in range(n_layers):
                w = wb_refs[2 * i][...]
                bias = wb_refs[2 * i + 1][...]
                z = jnp.dot(x, w, preferred_element_type=jnp.float32) + bias
                x = 0.5 * (jnp.tanh(0.5 * z) + 1.0)       # sigmoid via EUP tanh
            # (x - 0.5) * 2, then F.normalize(p=2, dim=1, eps=1e-12)
            x = (x - 0.5) * 2.0
            ssq = jnp.sum(x * x, axis=1, keepdims=True)
            x = x * lax.rsqrt(jnp.maximum(ssq, 1e-24))    # x / max(||x||, eps)
            out_ref[0] = x.astype(out_ref.dtype)

    return kernel


# --------------------------------- wrapper -----------------------------------
@functools.partial(jax.jit, static_argnames=("out_dim",))
def model_forward(x_nchw, cw, cb, wps, bps, *, out_dim):
    B, Cin, H, W = x_nchw.shape
    HW = H * W
    KC = 9 * Cin
    KCP, CFP = cw.shape
    assert KCP >= KC
    OUTP = wps[-1].shape[1]
    n_layers = len(wps)

    TB = _pick_tb(B)
    n_b = pl.cdiv(B, TB)
    B_pad = n_b * TB
    hw_tile = _pick_hw_tile(HW)
    n_hw = HW // hw_tile

    # wrapper-side glue (XLA): layout + im2col + zero padding + bf16 cast
    x_nhwc = jnp.transpose(x_nchw, (0, 2, 3, 1)).astype(jnp.float32)
    xp = jnp.pad(x_nhwc, ((0, 0), (1, 1), (1, 1), (0, 0)))
    # (B, HW, 9*Cin), tap-major columns matching conv_w.reshape(9*Cin, Cf).
    # TODO(synk): at realistic H/W/Cin, build the 9 conv taps in-kernel from a
    # DMA'd padded-NHWC tile instead of materializing the 9x im2col in HBM.
    patches = jnp.concatenate(
        [xp[:, kh:kh + H, kw:kw + W, :].reshape(B, HW, Cin)
         for kh in range(3) for kw in range(3)], axis=-1)
    patches = _pad_to(patches, (B_pad, HW, KCP)).astype(jnp.bfloat16)

    kernel = _make_kernel(n_layers, TB, 1.0 / HW)

    in_specs = [
        pl.BlockSpec((TB, hw_tile, KCP), lambda i, t: (i, t, 0)),
        pl.BlockSpec((KCP, CFP), lambda i, t: (0, 0)),
        pl.BlockSpec((1, CFP), lambda i, t: (0, 0)),
    ]
    args = [patches, cw, cb]
    for w, b in zip(wps, bps):
        args.extend([w, b])
        # grid-invariant weight/bias tiles (Pallas re-fetches only on index change)
        in_specs.append(pl.BlockSpec(w.shape, lambda i, t: (0, 0)))
        in_specs.append(pl.BlockSpec(b.shape, lambda i, t: (0, 0)))

    out = pl.pallas_call(
        kernel,
        out_shape=jax.ShapeDtypeStruct((n_b, TB, OUTP), jnp.float32),
        grid_spec=pltpu.PrefetchScalarGridSpec(
            num_scalar_prefetch=0,
            grid=(n_b, n_hw),
            in_specs=in_specs,
            out_specs=pl.BlockSpec((1, TB, OUTP), lambda i, t: (i, 0, 0)),
            scratch_shapes=[pltpu.VMEM((TB, CFP), jnp.float32)]),
        compiler_params=pltpu.CompilerParams(
            dimension_semantics=("parallel", "arbitrary"),
            vmem_limit_bytes=_vmem_limit_bytes(TB, hw_tile, KCP, CFP, wps, OUTP)),
    )(*args)
    return out.reshape(B_pad, OUTP)[:B, :out_dim]


if __name__ == "__main__":
    key = jax.random.PRNGKey(0)
    B, Cin, H, W = 2, 4, 16, 16
    Cf = 32
    linears = [Cf, 64, 16]

    k = jax.random.split(key, 8)
    x_nchw = jax.random.normal(k[0], (B, Cin, H, W), dtype=jnp.float32)

    # frozen "features" backbone: Conv2d(Cin, Cf, 3, padding=1) + ReLU (HWIO)
    conv_w = jax.random.normal(k[1], (3, 3, Cin, Cf), dtype=jnp.float32) * 0.1
    conv_b = jax.random.normal(k[2], (Cf,), dtype=jnp.float32) * 0.1

    weights, biases = [], []
    for i in range(len(linears) - 1):
        scale = 1.0 / float(linears[i]) ** 0.5
        weights.append(jax.random.normal(
            k[3 + i], (linears[i], linears[i + 1]), dtype=jnp.float32) * scale)
        biases.append(jax.random.normal(
            k[5 + i], (linears[i + 1],), dtype=jnp.float32) * 0.05)

    # one-time parameter packing (hoisted out of the per-call path)
    cw, cb, wps, bps = prepare_params(conv_w, conv_b, weights, biases)

    out = model_forward(x_nchw, cw, cb, wps, bps, out_dim=linears[-1])
    out = jax.block_until_ready(out)

    # pure-JAX f32 reference (PyTorch forward semantics, eval-mode dropout)
    def ref_forward(x_nchw):
        x_nhwc = jnp.transpose(x_nchw, (0, 2, 3, 1))
        y = lax.conv_general_dilated(
            x_nhwc, conv_w, (1, 1), "SAME",
            dimension_numbers=("NHWC", "HWIO", "NHWC")) + conv_b
        y = jnp.maximum(y, 0.0)
        h = jnp.mean(y, axis=(1, 2))
        for w_, b_ in zip(weights, biases):
            h = 1.0 / (1.0 + jnp.exp(-(h @ w_ + b_)))
        h = (h - 0.5) * 2.0
        n = jnp.maximum(jnp.sqrt(jnp.sum(h * h, axis=1, keepdims=True)), 1e-12)
        return h / n

    ref = ref_forward(x_nchw)
    assert out.shape == (B, linears[-1])
    # bf16 conv-matmul operands (f32 accumulation) -> tolerance loosened vs f32 ref
    err = float(jnp.max(jnp.abs(out - ref)))
    assert jnp.allclose(out, ref, rtol=1e-2, atol=1e-2), err
    print("KERNEL_OK")
</pallas_src>

<mosaic_0001>
module attributes {stable_mosaic.version = 11 : i64} {
  func.func @kernel(%arg0: i32, %arg1: i32, %arg2: memref<1x256x40xbf16, #tpu.memory_space<vmem>>, %arg3: memref<40x128xbf16, #tpu.memory_space<vmem>>, %arg4: memref<1x128xf32, #tpu.memory_space<vmem>>, %arg5: memref<128x128xf32, #tpu.memory_space<vmem>>, %arg6: memref<1x128xf32, #tpu.memory_space<vmem>>, %arg7: memref<128x128xf32, #tpu.memory_space<vmem>>, %arg8: memref<1x128xf32, #tpu.memory_space<vmem>>, %arg9: memref<1x1x128xf32, #tpu.memory_space<vmem>>, %arg10: memref<1x128xf32, #tpu.memory_space<vmem>>) attributes {dimension_semantics = [#tpu.dimension_semantics<parallel>, #tpu.dimension_semantics<arbitrary>], iteration_bounds = array<i64: 2, 1>, scalar_prefetch = 0 : i64, scratch_operands = 1 : i64, tpu.core_type = #tpu.core_type<tc>, window_params = [{transform_indices = @transform_0, window_bounds = array<i64: 1, 256, 40>}, {pipeline_mode = #tpu.pipeline_mode<synchronous>, transform_indices = @transform_1, window_bounds = array<i64: 40, 128>}, {pipeline_mode = #tpu.pipeline_mode<synchronous>, transform_indices = @transform_2, window_bounds = array<i64: 1, 128>}, {pipeline_mode = #tpu.pipeline_mode<synchronous>, transform_indices = @transform_3, window_bounds = array<i64: 128, 128>}, {pipeline_mode = #tpu.pipeline_mode<synchronous>, transform_indices = @transform_4, window_bounds = array<i64: 1, 128>}, {pipeline_mode = #tpu.pipeline_mode<synchronous>, transform_indices = @transform_5, window_bounds = array<i64: 128, 128>}, {pipeline_mode = #tpu.pipeline_mode<synchronous>, transform_indices = @transform_6, window_bounds = array<i64: 1, 128>}, {transform_indices = @transform_7, window_bounds = array<i64: 1, 1, 128>}]} {
    %c0_i32 = arith.constant 0 : i32
    %0 = arith.cmpi eq, %arg1, %c0_i32 : i32
    %1 = arith.extui %0 : i1 to i32
    %c0_i32_0 = arith.constant 0 : i32
    %2 = arith.cmpi ne, %1, %c0_i32_0 : i32
    scf.if %2 {
      %cst_15 = arith.constant 0.000000e+00 : f32
      %20 = vector.broadcast %cst_15 : f32 to vector<1x128xf32>
      %c0_16 = arith.constant 0 : index
      %c0_17 = arith.constant 0 : index
      %21 = vector.load %arg10[%c0_16, %c0_17] : memref<1x128xf32, #tpu.memory_space<vmem>>, vector<1x128xf32>
      tpu.vector_store %arg10[%c0_16, %c0_17], %20 {strides = array<i32>} : memref<1x128xf32, #tpu.memory_space<vmem>>, vector<1x128xf32>,
    } else {
    }
    %c0 = arith.constant 0 : index
    %c0_1 = arith.constant 0 : index
    %c0_2 = arith.constant 0 : index
    %3 = vector.load %arg2[%c0, %c0_1, %c0_2] : memref<1x256x40xbf16, #tpu.memory_space<vmem>>, vector<1x256x40xbf16>
    %4 = vector.shape_cast %3 : vector<1x256x40xbf16> to vector<256x40xbf16>
    %c0_3 = arith.constant 0 : index
    %c0_4 = arith.constant 0 : index
    %5 = vector.load %arg3[%c0_3, %c0_4] : memref<40x128xbf16, #tpu.memory_space<vmem>>, vector<40x128xbf16>
    %cst = arith.constant dense<0.000000e+00> : vector<256x128xf32>
    %6 = tpu.matmul %4, %5, %cst {dimension_numbers = #tpu.dot_dimension_numbers<[1], [0], [0], [1], [0, 0, 1, 1], [], []>} : vector<256x40xbf16>, vector<40x128xbf16>, vector<256x128xf32> -> vector<256x128xf32>
    %c0_5 = arith.constant 0 : index
    %c0_6 = arith.constant 0 : index
    %7 = vector.load %arg4[%c0_5, %c0_6] : memref<1x128xf32, #tpu.memory_space<vmem>>, vector<1x128xf32>
    %8 = vector.broadcast %7 : vector<1x128xf32> to vector<256x128xf32>
    %9 = arith.addf %6, %8 : vector<256x128xf32>
    %cst_7 = arith.constant 0.000000e+00 : f32
    %10 = vector.broadcast %cst_7 : f32 to vector<256x128xf32>
    %11 = arith.maximumf %9, %10 : vector<256x128xf32>
    %cst_8 = arith.constant dense<0.000000e+00> : vector<128xf32>
    %12 = vector.multi_reduction <add>, %11, %cst_8 [0] : vector<256x128xf32> to vector<128xf32>
    %13 = vector.shape_cast %12 : vector<128xf32> to vector<1x128xf32>
    %c0_9 = arith.constant 0 : index
    %c0_10 = arith.constant 0 : index
    %14 = vector.load %arg10[%c0_9, %c0_10] : memref<1x128xf32, #tpu.memory_space<vmem>>, vector<1x128xf32>
    %15 = arith.addf %14, %13 : vector<1x128xf32>
    %c0_11 = arith.constant 0 : index
    %c0_12 = arith.constant 0 : index
    %16 = vector.load %arg10[%c0_11, %c0_12] : memref<1x128xf32, #tpu.memory_space<vmem>>, vector<1x128xf32>
    tpu.vector_store %arg10[%c0_11, %c0_12], %15 {strides = array<i32>} : memref<1x128xf32, #tpu.memory_space<vmem>>, vector<1x128xf32>,
    %c0_i32_13 = arith.constant 0 : i32
    %17 = arith.cmpi eq, %arg1, %c0_i32_13 : i32
    %18 = arith.extui %17 : i1 to i32
    %c0_i32_14 = arith.constant 0 : i32
    %19 = arith.cmpi ne, %18, %c0_i32_14 : i32
    scf.if %19 {
      %c0_15 = arith.constant 0 : index
      %c0_16 = arith.constant 0 : index
      %20 = vector.load %arg10[%c0_15, %c0_16] : memref<1x128xf32, #tpu.memory_space<vmem>>, vector<1x128xf32>
      %cst_17 = arith.constant 3.906250e-03 : f32
      %21 = vector.broadcast %cst_17 : f32 to vector<1x128xf32>
      %22 = arith.mulf %20, %21 : vector<1x128xf32>
      %c0_18 = arith.constant 0 : index
      %c0_19 = arith.constant 0 : index
      %23 = vector.load %arg5[%c0_18, %c0_19] : memref<128x128xf32, #tpu.memory_space<vmem>>, vector<128x128xf32>
      %c0_20 = arith.constant 0 : index
      %c0_21 = arith.constant 0 : index
      %24 = vector.load %arg6[%c0_20, %c0_21] : memref<1x128xf32, #tpu.memory_space<vmem>>, vector<1x128xf32>
      %cst_22 = arith.constant dense<0.000000e+00> : vector<1x128xf32>
      %25 = tpu.matmul %22, %23, %cst_22 {dimension_numbers = #tpu.dot_dimension_numbers<[1], [0], [0], [1], [0, 0, 1, 1], [], []>} : vector<1x128xf32>, vector<128x128xf32>, vector<1x128xf32> -> vector<1x128xf32>
      %26 = arith.addf %25, %24 : vector<1x128xf32>
      %cst_23 = arith.constant 5.000000e-01 : f32
      %27 = vector.broadcast %cst_23 : f32 to vector<1x128xf32>
      %28 = arith.mulf %27, %26 : vector<1x128xf32>
      %29 = math.tanh %28 : vector<1x128xf32>
      %cst_24 = arith.constant 1.000000e+00 : f32
      %30 = vector.broadcast %cst_24 : f32 to vector<1x128xf32>
      %31 = arith.addf %29, %30 : vector<1x128xf32>
      %cst_25 = arith.constant 5.000000e-01 : f32
      %32 = vector.broadcast %cst_25 : f32 to vector<1x128xf32>
      %33 = arith.mulf %32, %31 : vector<1x128xf32>
      %c0_26 = arith.constant 0 : index
      %c0_27 = arith.constant 0 : index
      %34 = vector.load %arg7[%c0_26, %c0_27] : memref<128x128xf32, #tpu.memory_space<vmem>>, vector<128x128xf32>
      %c0_28 = arith.constant 0 : index
      %c0_29 = arith.constant 0 : index
      %35 = vector.load %arg8[%c0_28, %c0_29] : memref<1x128xf32, #tpu.memory_space<vmem>>, vector<1x128xf32>
      %cst_30 = arith.constant dense<0.000000e+00> : vector<1x128xf32>
      %36 = tpu.matmul %33, %34, %cst_30 {dimension_numbers = #tpu.dot_dimension_numbers<[1], [0], [0], [1], [0, 0, 1, 1], [], []>} : vector<1x128xf32>, vector<128x128xf32>, vector<1x128xf32> -> vector<1x128xf32>
      %37 = arith.addf %36, %35 : vector<1x128xf32>
      %cst_31 = arith.constant 5.000000e-01 : f32
      %38 = vector.broadcast %cst_31 : f32 to vector<1x128xf32>
      %39 = arith.mulf %38, %37 : vector<1x128xf32>
      %40 = math.tanh %39 : vector<1x128xf32>
      %cst_32 = arith.constant 1.000000e+00 : f32
      %41 = vector.broadcast %cst_32 : f32 to vector<1x128xf32>
      %42 = arith.addf %40, %41 : vector<1x128xf32>
      %cst_33 = arith.constant 5.000000e-01 : f32
      %43 = vector.broadcast %cst_33 : f32 to vector<1x128xf32>
      %44 = arith.mulf %43, %42 : vector<1x128xf32>
      %cst_34 = arith.constant 5.000000e-01 : f32
      %45 = vector.broadcast %cst_34 : f32 to vector<1x128xf32>
      %46 = arith.subf %44, %45 : vector<1x128xf32>
      %cst_35 = arith.constant 2.000000e+00 : f32
      %47 = vector.broadcast %cst_35 : f32 to vector<1x128xf32>
      %48 = arith.mulf %46, %47 : vector<1x128xf32>
      %49 = arith.mulf %48, %48 : vector<1x128xf32>
      %cst_36 = arith.constant dense<0.000000e+00> : vector<1xf32>
      %50 = vector.multi_reduction <add>, %49, %cst_36 [1] : vector<1x128xf32> to vector<1xf32>
      %51 = vector.shape_cast %50 : vector<1xf32> to vector<1x1xf32>
      %cst_37 = arith.constant 1.000000e-24 : f32
      %52 = vector.broadcast %cst_37 : f32 to vector<1x1xf32>
      %53 = arith.maximumf %51, %52 : vector<1x1xf32>
      %54 = math.rsqrt %53 : vector<1x1xf32>
      %55 = vector.broadcast %54 : vector<1x1xf32> to vector<1x128xf32>
      %56 = arith.mulf %48, %55 : vector<1x128xf32>
      %c0_38 = arith.constant 0 : index
      %c0_39 = arith.constant 0 : index
      %c0_40 = arith.constant 0 : index
      %57 = vector.load %arg9[%c0_38, %c0_39, %c0_40] : memref<1x1x128xf32, #tpu.memory_space<vmem>>, vector<1x1x128xf32>
      %58 = vector.shape_cast %57 : vector<1x1x128xf32> to vector<1x128xf32>
      %59 = vector.shape_cast %56 : vector<1x128xf32> to vector<1x1x128xf32>
      tpu.vector_store %arg9[%c0_38, %c0_39, %c0_40], %59 {strides = array<i32>} : memref<1x1x128xf32, #tpu.memory_space<vmem>>, vector<1x1x128xf32>,
    } else {
    }
    return
  }
  func.func @transform_0(%arg0: i32, %arg1: i32) -> (i32, i32, i32) {
    %c0_i32 = arith.constant 0 : i32
    %c0_i32_0 = arith.constant 0 : i32
    return %arg0, %arg1, %c0_i32 : i32, i32, i32
  }
  func.func @transform_1(%arg0: i32, %arg1: i32) -> (i32, i32) {
    %c0_i32 = arith.constant 0 : i32
    %c0_i32_0 = arith.constant 0 : i32
    %c0_i32_1 = arith.constant 0 : i32
    return %c0_i32, %c0_i32_0 : i32, i32
  }
  func.func @transform_2(%arg0: i32, %arg1: i32) -> (i32, i32) {
    %c0_i32 = arith.constant 0 : i32
    %c0_i32_0 = arith.constant 0 : i32
    %c0_i32_1 = arith.constant 0 : i32
    return %c0_i32, %c0_i32_0 : i32, i32
  }
  func.func @transform_3(%arg0: i32, %arg1: i32) -> (i32, i32) {
    %c0_i32 = arith.constant 0 : i32
    %c0_i32_0 = arith.constant 0 : i32
    %c0_i32_1 = arith.constant 0 : i32
    return %c0_i32, %c0_i32_0 : i32, i32
  }
  func.func @transform_4(%arg0: i32, %arg1: i32) -> (i32, i32) {
    %c0_i32 = arith.constant 0 : i32
    %c0_i32_0 = arith.constant 0 : i32
    %c0_i32_1 = arith.constant 0 : i32
    return %c0_i32, %c0_i32_0 : i32, i32
  }
  func.func @transform_5(%arg0: i32, %arg1: i32) -> (i32, i32) {
    %c0_i32 = arith.constant 0 : i32
    %c0_i32_0 = arith.constant 0 : i32
    %c0_i32_1 = arith.constant 0 : i32
    return %c0_i32, %c0_i32_0 : i32, i32
  }
  func.func @transform_6(%arg0: i32, %arg1: i32) -> (i32, i32) {
    %c0_i32 = arith.constant 0 : i32
    %c0_i32_0 = arith.constant 0 : i32
    %c0_i32_1 = arith.constant 0 : i32
    return %c0_i32, %c0_i32_0 : i32, i32
  }
  func.func @transform_7(%arg0: i32, %arg1: i32) -> (i32, i32, i32) {
    %c0_i32 = arith.constant 0 : i32
    %c0_i32_0 = arith.constant 0 : i32
    %c0_i32_1 = arith.constant 0 : i32
    return %arg0, %c0_i32, %c0_i32_0 : i32, i32, i32
  }
}

</mosaic_0001>

<bundles_post_ra>
// kernel: model_forward.1
= control target key start
LH: loop header
LB: loop body
LE: loop exit
PB: predicated region body
PF: predicated region fallthrough
CT: control target
= control target key end

     0   :  { %12 = vsyncpa [#allocation4], 0  ;;  %s1746_s0 = inlined_call_operand.vmem [shape: bf16[2,256,40], index: 0, kind: input, shape index: {}]   ;;  %s1747_s1 = inlined_call_operand.vmem [shape: bf16[40,128], index: 1, kind: input, shape index: {}]   ;;  %s1748_s2 = inlined_call_operand.vmem [shape: f32[1,128], index: 2, kind: input, shape index: {}]   ;;  %s1749_s3 = inlined_call_operand.vmem [shape: f32[128,128], index: 3, kind: input, shape index: {}]   ;;  %s1750_s4 = inlined_call_operand.vmem [shape: f32[1,128], index: 4, kind: input, shape index: {}]   ;;  %s1751_s5 = inlined_call_operand.vmem [shape: f32[128,128], index: 5, kind: input, shape index: {}]   ;;  %s1752_s6 = inlined_call_operand.vmem [shape: f32[1,128], index: 6, kind: input, shape index: {}]   ;;  %s1753_s7 = inlined_call_operand.hbm [shape: f32[2,1,128], index: 7, kind: output, shape index: {}]  }
   0x1   :  { %14 = vsyncpa [#allocation4 + $0x1], 0  ;;  %s1428_s24 = smov 0   ;;  %s1430_s25 = smov 0  }
   0x2   :  { %s1432_s26 = smov 0   ;;  %s1434_s27 = smov 0  }
   0x3   :  { %s1436_s28 = smov 0   ;;  %s1438_s29 = smov 0  }
   0x4 LB: > { %s1015_s30 = sadd.s32 4294967295, %s1383_s29   ;;  %s1016_s8 = sadd.s32 4294967294, %s1383_s29   ;;  %s1383_s29 = sphi %s1438_s29, %s20_s29   ;;  %s1379_s28 = sphi %s1436_s28, %s1760_s28   ;;  %s1375_s27 = sphi %s1434_s27, %s1759_s27   ;;  %s1371_s26 = sphi %s1432_s26, %s1758_s26   ;;  %s1367_s25 = sphi %s1430_s25, %s1757_s25   ;;  %s1363_s24 = sphi %s1428_s24, %s1756_s24  }
   0x5   : > { %s32_s9 = sadd.s32 1, %s1379_s28  ;;  %s193_s10 = sadd.s32 1, %s1371_s26 }
   0x6   : > { %p34_p0 = scmp.ge.s32.totalorder %s32_s9, 2  ;;  %p203_p1 = scmp.ne.s32.totalorder %s1371_s26, %s1367_s25 }
   0x7   : > { %p204_p2 = scmp.eq.s32.totalorder %s1015_s30, 1  ;;  %p209_p3 = scmp.ne.s32.totalorder %s1367_s25, %s1363_s24 }
   0x8   : > { %s1762_s9 = smov (%p34_p0, %s32_s9), 0  ;;  %p210_p5 = scmp.eq.s32.totalorder %s1016_s8, 1 }
   0x9   : > { %p1468_p4 = por %p204_p2, %p203_p1  ;;  %s190_s12 = ssub.s32 %s1379_s28, %s1762_s9 }
   0xa   : > { %p1019_p6 = scmp.ge.s32.totalorder %s1383_s29, 1  ;;  %p191_p7 = scmp.eq.s32.totalorder %s190_s12, 0 }
   0xb   : > { %p1475_p8 = por %p210_p5, %p209_p3  ;;  %p259_p9 = scmp.lt.s32.totalorder %s1383_s29, 3 }
   0xc   : > { %s1481_s14 = scalar_select %p191_p7, %s1371_s26, %s193_s10  }
   0xd   : > { %p260_p10 = pnand %p1019_p6, %p259_p9 }
   0xe   : > { %p295_p11 = scmp.lt.s32.totalorder (!%p260_p10), %s1375_s27, 1  ;;  %s292_s18 = sand.u32 (!%p260_p10), 1, %s1367_s25  }
   0xf   : > { %263 = sbr.rel (%p260_p10) target bundleno = 928 (0x3a0), region = 48  ;;  %s1059_s19 = sshll.u32 (!%p260_p10), %s1375_s27, 4 }
  0x10   : > { %s293_s20 = scalar_lea.vmem (!%p260_p10), [#allocation3], %s292_s18  ;;  %s944_s30 = scalar_lea.hbm (!%p260_p10), %s1753_s7, %s1059_s19 }
  0x11   : > { %s1387_s12 = smov (!%p260_p10), [#allocation3]  }
  0x12   : > { %s1311_s15 = sshll.u32 (!%p260_p10), %s1387_s12, 4  ;;  %s1312_s15 = int_to_ptr.vmem [resolvable:$false] %s1311_s15 }
  0x14   : > { %v1282_v0 = vld [vmem:[%s1747_s1 + $0x10] ss:$0 sps:$4 sm:$0xff]   ;;  %vm498_vm0 = vcmask 1043456   ;;  %v1283_v1 = vld [vmem:[%s1747_s1 + $0x8] sm:$0xff]   ;;  %v1284_v3 = vld [vmem:[%s1747_s1] sm:$0xff]   ;;  %s296_s21 = scalar_select %p295_p11, %s1375_s27, 1 }
  0x15   : > { %1224 = vmatprep.subr.msk.bf16.mxu0 %vm498_vm0, %v1282_v0  ;;  %v500_v2 = vsel %vm498_vm0, %v1282_v0, 0  ;;  %vm449_vm1 = vcmask 326656   ;;  %v1385_v20 = vmov 0.0   ;;  %v755_v21 = vld [vmem:[%s1749_s3 + $0x78] sm:$0xff]  ;;  %v754_v22 = vld [vmem:[%s1749_s3 + $0x70] sm:$0xff]  ;;  %v753_v23 = vld [vmem:[%s1749_s3 + $0x68] sm:$0xff] }
  0x16   : > { %1117 = vmatpush3.bf16.msra.mxu0 %v500_v2  ;;  %s1062_s22 = sshll.u32 %s296_s21, 7  ;;  %309 = vst [vmem:[#allocation2] sm:$0x1] %v1385_v20  ;;  %1154 = vmatprep.subr.mxu1 %v1385_v20  ;;  %v752_v24 = vld [vmem:[%s1749_s3 + $0x60] sm:$0xff]  ;;  %v751_v25 = vld [vmem:[%s1749_s3 + $0x58] sm:$0xff]  ;;  %v750_v26 = vld [vmem:[%s1749_s3 + $0x50] sm:$0xff] }
  0x17   : > { %1118 = vmatprep.subr.bf16.mxu0 %v1283_v1  ;;  %s1497_s8 = scalar_lea.vmem %s1746_s0, %s1062_s22  ;;  %1155 = vmatpush3.msra.mxu1 %v755_v21  ;;  %v749_v27 = vld [vmem:[%s1749_s3 + $0x48] sm:$0xff]  ;;  %v748_v28 = vld [vmem:[%s1749_s3 + $0x40] sm:$0xff]  ;;  %v747_v29 = vld [vmem:[%s1749_s3 + $0x38] sm:$0xff]  ;;  %vm1386_vm2 = vmmov 0   ;;  %vm925_vm3 = vcmask 1040384   ;;  %s946_s21 = sshll.u32 %s293_s20, 4  ;;  %s947_s21 = int_to_ptr.vmem [resolvable:$true] %s946_s21 }
  0x18   : > { %v1285_v4 = vld [vmem:[%s1497_s8] sm:$0xff]   ;;  %v1286_v5 = vld [vmem:[%s1497_s8 + $0x8] sm:$0xff]   ;;  %v1287_v6 = vld [vmem:[%s1497_s8 + $0x10] sm:$0xff]   ;;  %1156 = vmatprep.subr.mxu1 %v1385_v20  ;;  %1186 = vmatprep.mubr.msk.f32.mxu1 %vm1386_vm2, %v1385_v20  ;;  %s1307_s10 = scalar_lea.vmem %s947_s21, 16  ;;  %s1313_s27 = scalar_lea.vmem %s1312_s15, 32 }
  0x19   : > { %1122 = vmatprep.mubr.msk.bf16.mxu0 %vm449_vm1, %v1285_v4  ;;  %v1288_v7 = vld [vmem:[%s1497_s8 + $0x18] sm:$0xff]   ;;  %v1289_v8 = vld [vmem:[%s1497_s8 + $0x20] sm:$0xff]   ;;  %v1290_v9 = vld [vmem:[%s1497_s8 + $0x28] sm:$0xff]   ;;  %1157 = vmatpush3.msra.mxu1 %v754_v22  ;;  %p1308_p12 = scmp.ne.s32.totalorder %s947_s21, %s1307_s10  ;;  %p1314_p1 = scmp.lt.s32.totalorder %s947_s21, %s1312_s15 }
  0x1a   : > { %1119 = vmatpush3.bf16.msra.mxu0 %v1283_v1  ;;  %v1291_v10 = vld [vmem:[%s1497_s8 + $0x30] sm:$0xff]   ;;  %v1292_v11 = vld [vmem:[%s1497_s8 + $0x38] sm:$0xff]   ;;  %v1293_v12 = vld [vmem:[%s1497_s8 + $0x40] sm:$0xff]   ;;  %1158 = vmatprep.subr.mxu1 %v1385_v20  ;;  %p1315_p2 = scmp.lt.s32.totalorder %s1313_s27, %s1307_s10 }
  0x1b   : > { %1120 = vmatprep.subr.bf16.mxu0 %v1284_v3  ;;  %v1294_v13 = vld [vmem:[%s1497_s8 + $0x48] sm:$0xff]   ;;  %v1295_v14 = vld [vmem:[%s1497_s8 + $0x50] sm:$0xff]   ;;  %v1296_v15 = vld [vmem:[%s1497_s8 + $0x58] sm:$0xff]   ;;  %1159 = vmatpush3.msra.mxu1 %v753_v23  ;;  %p1309_p13 = pnand %p1308_p12, %p1468_p4 }
  0x1c   : > { %v1297_v16 = vld [vmem:[%s1497_s8 + $0x60] sm:$0xff]   ;;  %v1298_v17 = vld [vmem:[%s1497_s8 + $0x68] sm:$0xff]   ;;  %v1299_v18 = vld [vmem:[%s1497_s8 + $0x70] sm:$0xff]   ;;  %1160 = vmatprep.subr.mxu1 %v1385_v20  ;;  %p1316_p3 = por %p1315_p2, %p1314_p1 }
  0x1d   : > { %v1300_v19 = vld [vmem:[%s1497_s8 + $0x78] sm:$0xff]   ;;  %1161 = vmatpush3.msra.mxu1 %v752_v24  ;;  %v746_v30 = vld [vmem:[%s1749_s3 + $0x30] sm:$0xff]  ;;  %v745_v31 = vld [vmem:[%s1749_s3 + $0x28] sm:$0xff]  ;;  %s934_s8 = scalar_lea.sflag [#allocation4], %s292_s18  ;;  %p1310_p0 = pneg %p1309_p13 }
  0x1e   : > { %1121 = vmatpush3.bf16.msra.mxu0 %v1284_v3  ;;  %1162 = vmatprep.subr.mxu1 %v1385_v20  ;;  %v744_v32 = vld [vmem:[%s1749_s3 + $0x20] sm:$0xff]  ;;  %v743_v33 = vld [vmem:[%s1749_s3 + $0x18] sm:$0xff]  ;;  %v742_v34 = vld [vmem:[%s1749_s3 + $0x10] sm:$0xff] }
  0x1f   : > { %1163 = vmatpush3.msra.mxu1 %v751_v25  ;;  %v741_v35 = vld [vmem:[%s1749_s3 + $0x8] sm:$0xff]  ;;  %v740_v36 = vld [vmem:[%s1749_s3] sm:$0xff]  ;;  %p1317_p5 = pnand %p1316_p3, %p1310_p0 }
  0x20   : > { %1164 = vmatprep.subr.mxu1 %v1385_v20  ;;  %v1602_v39 = vld [vmem:[%s1748_s2] ss:$0 sm:$0xff] }
  0x21   : > { %1123 = vmatmul.mubr.msk.bf16.vlgmr.msra.gmra.mxu0 %vm449_vm1, %v1286_v5  ;;  %1165 = vmatpush3.msra.mxu1 %v750_v26 }
  0x22   : > { %1126 = vmatprep.mubr.msk.bf16.mxu0 %vm449_vm1, %v1287_v6  ;;  %1166 = vmatprep.subr.mxu1 %v1385_v20 }
  0x23   : > { %1167 = vmatpush3.msra.mxu1 %v749_v27 }
  0x24   : > { %1168 = vmatprep.subr.mxu1 %v1385_v20 }
  0x25   : > { %1169 = vmatpush3.msra.mxu1 %v748_v28 }
  0x26   : > { %1170 = vmatprep.subr.mxu1 %v1385_v20 }
  0x27   : > { %1171 = vmatpush3.msra.mxu1 %v747_v29 }
  0x28   : > { %1172 = vmatprep.subr.mxu1 %v1385_v20 }
  0x29   : > { %1127 = vmatmul.mubr.msk.bf16.gmra.mxu0 %vm449_vm1, %v1288_v7  ;;  %1173 = vmatpush3.msra.mxu1 %v746_v30 }
  0x2a   : > { %1130 = vmatprep.mubr.msk.bf16.mxu0 %vm449_vm1, %v1289_v8  ;;  %1174 = vmatprep.subr.mxu1 %v1385_v20 }
  0x2b   : > { %1175 = vmatpush3.msra.mxu1 %v745_v31 }
  0x2c   : > { %1176 = vmatprep.subr.mxu1 %v1385_v20 }
  0x2d   : > { %1177 = vmatpush3.msra.mxu1 %v744_v32 }
  0x2e   : > { %1178 = vmatprep.subr.mxu1 %v1385_v20 }
  0x2f   : > { %1179 = vmatpush3.msra.mxu1 %v743_v33 }
  0x30   : > { %1180 = vmatprep.subr.mxu1 %v1385_v20 }
  0x31   : > { %1131 = vmatmul.mubr.msk.bf16.gmra.mxu0 %vm449_vm1, %v1290_v9  ;;  %1181 = vmatpush3.msra.mxu1 %v742_v34 }
  0x32   : > { %1134 = vmatprep.mubr.msk.bf16.mxu0 %vm449_vm1, %v1291_v10  ;;  %1182 = vmatprep.subr.mxu1 %v1385_v20 }
  0x33   : > { %1183 = vmatpush3.msra.mxu1 %v741_v35 }
  0x34   : > { %1184 = vmatprep.subr.mxu1 %v1385_v20 }
  0x35   : > { %1185 = vmatpush3.msra.mxu1 %v740_v36 }
  0x36   : > { %1189 = vmatprep.subr.mxu1 %v1385_v20 }
  0x39   : > { %1135 = vmatmul.mubr.msk.bf16.gmra.mxu0 %vm449_vm1, %v1292_v11 }
  0x3a   : > { %1138 = vmatprep.mubr.msk.bf16.mxu0 %vm449_vm1, %v1293_v12 }
  0x41   : > { %1139 = vmatmul.mubr.msk.bf16.gmra.mxu0 %vm449_vm1, %v1294_v13 }
  0x42   : > { %1142 = vmatprep.mubr.msk.bf16.mxu0 %vm449_vm1, %v1295_v14 }
  0x49   : > { %1143 = vmatmul.mubr.msk.bf16.gmra.mxu0 %vm449_vm1, %v1296_v15 }
  0x4a   : > { %1146 = vmatprep.mubr.msk.bf16.mxu0 %vm449_vm1, %v1297_v16 }
  0x51   : > { %1147 = vmatmul.mubr.msk.bf16.gmra.mxu0 %vm449_vm1, %v1298_v17 }
  0x52   : > { %1150 = vmatprep.mubr.msk.bf16.mxu0 %vm449_vm1, %v1299_v18 }
  0x59   : > { %1151 = vmatmul.mubr.msk.bf16.gmra.mxu0 %vm449_vm1, %v1300_v19 }
  0xe1   : > { %v1124_v37 = vpop.f32.mrf.mxu0 }
  0xe2   : > { %v545_v43 = vadd.f32 %v1124_v37, %v1602_v39 }
  0xe3   : > { %v536_v38 = vpop.f32.mrf.mxu0 }
  0xe4   : > { %v537_v41 = vadd.f32 %v1602_v39, %v536_v38  ;;  %v665_v50 = vmax.f32 %v545_v43, 0.0 }
  0xe5   : > { %v1125_v40 = vpop.f32.mrf.mxu0 }
  0xe6   : > { %v663_v46 = vmax.f32 %v537_v41, 0.0  ;;  %v548_v47 = vadd.f32 %v1125_v40, %v1602_v39 }
  0xe7   : > { %v539_v42 = vpop.f32.mrf.mxu0 }
  0xe8   : > { %v540_v44 = vadd.f32 %v1602_v39, %v539_v42  ;;  %v666_v54 = vmax.f32 %v548_v47, 0.0 }
  0xe9   : > { %v1128_v45 = vpop.f32.mrf.mxu0 }
  0xea   : > { %v664_v48 = vmax.f32 %v540_v44, 0.0  ;;  %v561_v57 = vadd.f32 %v1128_v45, %v1602_v39 }
  0xeb   : > { %v552_v49 = vpop.f32.mrf.mxu0 }
  0xec   : > { %v695_v51 = vadd.f32 %v664_v48, %v663_v46  ;;  %v553_v52 = vadd.f32 %v1602_v39, %v552_v49  ;;  %v669_v2 = vmax.f32 %v561_v57, 0.0 }
  0xed   : > { %v1129_v53 = vpop.f32.mrf.mxu0 }
  0xee   : > { %v696_v55 = vadd.f32 %v695_v51, %v665_v50  ;;  %v667_v58 = vmax.f32 %v553_v52, 0.0  ;;  %v564_v63 = vadd.f32 %v1129_v53, %v1602_v39 }
  0xef   : > { %v555_v56 = vpop.f32.mrf.mxu0 }
  0xf0   : > { %v697_v59 = vadd.f32 %v696_v55, %v666_v54  ;;  %v556_v60 = vadd.f32 %v1602_v39, %v555_v56  ;;  %v670_v6 = vmax.f32 %v564_v63, 0.0 }
  0xf1   : > { %v1132_v61 = vpop.f32.mrf.mxu0 }
  0xf2   : > { %v698_v62 = vadd.f32 %v697_v59, %v667_v58  ;;  %v668_v0 = vmax.f32 %v556_v60, 0.0  ;;  %v577_v9 = vadd.f32 %v1132_v61, %v1602_v39 }
  0xf3   : > { %v568_v1 = vpop.f32.mrf.mxu0 }
  0xf4   : > { %v699_v3 = vadd.f32 %v698_v62, %v668_v0  ;;  %v569_v4 = vadd.f32 %v1602_v39, %v568_v1  ;;  %v673_v18 = vmax.f32 %v577_v9, 0.0 }
  0xf5   : > { %v1133_v5 = vpop.f32.mrf.mxu0 }
  0xf6   : > { %v700_v7 = vadd.f32 %v699_v3, %v669_v2  ;;  %v671_v10 = vmax.f32 %v569_v4, 0.0  ;;  %v580_v15 = vadd.f32 %v1133_v5, %v1602_v39 }
  0xf7   : > { %v571_v8 = vpop.f32.mrf.mxu0 }
  0xf8   : > { %v701_v11 = vadd.f32 %v700_v7, %v670_v6  ;;  %v572_v12 = vadd.f32 %v1602_v39, %v571_v8  ;;  %v674_v23 = vmax.f32 %v580_v15, 0.0 }
  0xf9   : > { %v1136_v13 = vpop.f32.mrf.mxu0 }
  0xfa   : > { %v702_v14 = vadd.f32 %v701_v11, %v671_v10  ;;  %v672_v16 = vmax.f32 %v572_v12, 0.0  ;;  %v593_v26 = vadd.f32 %v1136_v13, %v1602_v39 }
  0xfb   : > { %v584_v17 = vpop.f32.mrf.mxu0 }
  0xfc   : > { %v703_v19 = vadd.f32 %v702_v14, %v672_v16  ;;  %v585_v21 = vadd.f32 %v1602_v39, %v584_v17  ;;  %v677_v35 = vmax.f32 %v593_v26, 0.0 }
  0xfd   : > { %v1137_v22 = vpop.f32.mrf.mxu0 }
  0xfe   : > { %v704_v24 = vadd.f32 %v703_v19, %v673_v18  ;;  %v675_v27 = vmax.f32 %v585_v21, 0.0  ;;  %v596_v32 = vadd.f32 %v1137_v22, %v1602_v39 }
  0xff   : > { %v587_v25 = vpop.f32.mrf.mxu0 }
 0x100   : > { %v705_v28 = vadd.f32 %v704_v24, %v674_v23  ;;  %v588_v29 = vadd.f32 %v1602_v39, %v587_v25  ;;  %v678_v40 = vmax.f32 %v596_v32, 0.0 }
 0x101   : > { %v1140_v30 = vpop.f32.mrf.mxu0 }
 0x102   : > { %v706_v31 = vadd.f32 %v705_v28, %v675_v27  ;;  %v676_v33 = vmax.f32 %v588_v29, 0.0  ;;  %v609_v43 = vadd.f32 %v1140_v30, %v1602_v39 }
 0x103   : > { %v600_v34 = vpop.f32.mrf.mxu0 }
 0x104   : > { %v707_v36 = vadd.f32 %v706_v31, %v676_v33  ;;  %v601_v37 = vadd.f32 %v1602_v39, %v600_v34  ;;  %v681_v52 = vmax.f32 %v609_v43, 0.0 }
 0x105   : > { %v1141_v38 = vpop.f32.mrf.mxu0 }
 0x106   : > { %v708_v41 = vadd.f32 %v707_v36, %v677_v35  ;;  %v679_v44 = vmax.f32 %v601_v37, 0.0  ;;  %v612_v49 = vadd.f32 %v1141_v38, %v1602_v39 }
 0x107   : > { %v603_v42 = vpop.f32.mrf.mxu0 }
 0x108   : > { %v709_v45 = vadd.f32 %v708_v41, %v678_v40  ;;  %v604_v46 = vadd.f32 %v1602_v39, %v603_v42  ;;  %v682_v56 = vmax.f32 %v612_v49, 0.0 }
 0x109   : > { %v1144_v47 = vpop.f32.mrf.mxu0 }
 0x10a   : > { %v710_v48 = vadd.f32 %v709_v45, %v679_v44  ;;  %v680_v50 = vmax.f32 %v604_v46, 0.0  ;;  %v625_v59 = vadd.f32 %v1144_v47, %v1602_v39  ;;  %v732_v46 = vld [vmem:[#allocation2] sm:$0x1] }
 0x10b   : > { %v616_v51 = vpop.f32.mrf.mxu0 }
 0x10c   : > { %v711_v53 = vadd.f32 %v710_v48, %v680_v50  ;;  %v617_v54 = vadd.f32 %v1602_v39, %v616_v51  ;;  %v685_v4 = vmax.f32 %v625_v59, 0.0  ;;  %v845_v51 = vld [vmem:[%s1751_s5 + $0x70] sm:$0xff] }
 0x10d   : > { %v1145_v55 = vpop.f32.mrf.mxu0  ;;  %v837_v59 = vld [vmem:[%s1751_s5 + $0x30] sm:$0xff] }
 0x10e   : > { %v712_v57 = vadd.f32 %v711_v53, %v681_v52  ;;  %v683_v60 = vmax.f32 %v617_v54, 0.0  ;;  %v628_v1 = vadd.f32 %v1145_v55, %v1602_v39  ;;  %v844_v52 = vld [vmem:[%s1751_s5 + $0x68] sm:$0xff]  ;;  %v843_v53 = vld [vmem:[%s1751_s5 + $0x60] sm:$0xff]  ;;  %v842_v54 = vld [vmem:[%s1751_s5 + $0x58] sm:$0xff] }
 0x10f   : > { %v619_v58 = vpop.f32.mrf.mxu0  ;;  %v841_v55 = vld [vmem:[%s1751_s5 + $0x50] sm:$0xff] }
 0x110   : > { %v713_v61 = vadd.f32 %v712_v57, %v682_v56  ;;  %v620_v62 = vadd.f32 %v1602_v39, %v619_v58  ;;  %v686_v8 = vmax.f32 %v628_v1, 0.0  ;;  %v840_v56 = vld [vmem:[%s1751_s5 + $0x48] sm:$0xff]  ;;  %v839_v57 = vld [vmem:[%s1751_s5 + $0x40] sm:$0xff]  ;;  %v838_v58 = vld [vmem:[%s1751_s5 + $0x38] sm:$0xff] }
 0x111   : > { %v1148_v63 = vpop.f32.mrf.mxu0  ;;  %v831_v1 = vld [vmem:[%s1751_s5] sm:$0xff] }
 0x112   : > { %v714_v0 = vadd.f32 %v713_v61, %v683_v60  ;;  %v684_v2 = vmax.f32 %v620_v62, 0.0  ;;  %v641_v11 = vadd.f32 %v1148_v63, %v1602_v39  ;;  %v836_v60 = vld [vmem:[%s1751_s5 + $0x28] sm:$0xff]  ;;  %v835_v61 = vld [vmem:[%s1751_s5 + $0x20] sm:$0xff]  ;;  %v834_v62 = vld [vmem:[%s1751_s5 + $0x18] sm:$0xff] }
 0x113   : > { %v632_v3 = vpop.f32.mrf.mxu0  ;;  %v833_v63 = vld [vmem:[%s1751_s5 + $0x10] sm:$0xff] }
 0x114   : > { %v715_v5 = vadd.f32 %v714_v0, %v684_v2  ;;  %v633_v6 = vadd.f32 %v1602_v39, %v632_v3  ;;  %v689_v21 = vmax.f32 %v641_v11, 0.0  ;;  %v832_v0 = vld [vmem:[%s1751_s5 + $0x8] sm:$0xff]  ;;  %v756_v2 = vld [vmem:[%s1750_s4] sm:$0x1] }
 0x115   : > { %v1149_v7 = vpop.f32.mrf.mxu0 }
 0x116   : > { %v716_v9 = vadd.f32 %v715_v5, %v685_v4  ;;  %v687_v12 = vmax.f32 %v633_v6, 0.0  ;;  %v644_v17 = vadd.f32 %v1149_v7, %v1602_v39 }
 0x117   : > { %v635_v10 = vpop.f32.mrf.mxu0 }
 0x118   : > { %v717_v13 = vadd.f32 %v716_v9, %v686_v8  ;;  %v636_v14 = vadd.f32 %v1602_v39, %v635_v10  ;;  %v690_v25 = vmax.f32 %v644_v17, 0.0 }
 0x119   : > { %v1152_v15 = vpop.f32.mrf.mxu0 }
 0x11a   : > { %v718_v16 = vadd.f32 %v717_v13, %v687_v12  ;;  %v688_v18 = vmax.f32 %v636_v14, 0.0  ;;  %v657_v28 = vadd.f32 %v1152_v15, %v1602_v39 }
 0x11b   : > { %v648_v19 = vpop.f32.mrf.mxu0 }
 0x11c   : > { %v719_v22 = vadd.f32 %v718_v16, %v688_v18  ;;  %v649_v23 = vadd.f32 %v1602_v39, %v648_v19  ;;  %v693_v35 = vmax.f32 %v657_v28, 0.0 }
 0x11d   : > { %v1153_v24 = vpop.f32.mrf.mxu0 }
 0x11e   : > { %v720_v26 = vadd.f32 %v719_v22, %v689_v21  ;;  %v691_v29 = vmax.f32 %v649_v23, 0.0  ;;  %v660_v33 = vadd.f32 %v1153_v24, %v1602_v39 }
 0x11f   : > { %v651_v27 = vpop.f32.mrf.mxu0 }
 0x120   : > { %v721_v30 = vadd.f32 %v720_v26, %v690_v25  ;;  %v652_v31 = vadd.f32 %v1602_v39, %v651_v27  ;;  %v694_v37 = vmax.f32 %v660_v33, 0.0  ;;  %v846_v39 = vld [vmem:[%s1751_s5 + $0x78] sm:$0xff] }
 0x122   : > { %v722_v32 = vadd.f32 %v721_v30, %v691_v29  ;;  %v692_v34 = vmax.f32 %v652_v31, 0.0 }
 0x124   : > { %v723_v36 = vadd.f32 %v722_v32, %v692_v34 }
 0x126   : > { %v724_v38 = vadd.f32 %v723_v36, %v693_v35 }
 0x128   : > { %v725_v40 = vadd.f32 %v724_v38, %v694_v37 }
 0x12a   : > { %v726_v41 = vrot.slane %v725_v40, 4 }
 0x12c   : > { %v727_v42 = vadd.f32 %v726_v41, %v725_v40 }
 0x12e   : > { %v728_v43 = vrot.slane %v727_v42, 2 }
 0x130   : > { %v729_v44 = vadd.f32 %v728_v43, %v727_v42 }
 0x132   : > { %v730_v45 = vrot.slane %v729_v44, 1 }
 0x134   : > { %v731_v47 = vadd.f32 %v730_v45, %v729_v44 }
 0x136   : > { %v733_v48 = vadd.f32 %v732_v46, %v731_v47 }
 0x138   : > { %734 = vst [vmem:[#allocation2] sm:$0x1] %v733_v48 }
 0x13f   : > { %v738_v49 = vld [vmem:[#allocation2] sm:$0x1] }
 0x140   : > { %v739_v50 = vmul.f32 0.00390625, %v738_v49 }
 0x142   : > { %1187 = vmatmul.mubr.f32.vlgmr.msra.gmra.mxu1 %v739_v50 }
 0x143   : > { %1190 = vmatpush3.msra.mxu1 %v846_v39  ;;  %1221 = vmatprep.mubr.msk.f32.mxu1 %vm1386_vm2, %v1385_v20 }
 0x144   : > { %1191 = vmatprep.subr.mxu1 %v1385_v20 }
 0x145   : > { %1192 = vmatpush3.msra.mxu1 %v845_v51 }
 0x146   : > { %1193 = vmatprep.subr.mxu1 %v1385_v20 }
 0x147   : > { %1194 = vmatpush3.msra.mxu1 %v844_v52 }
 0x148   : > { %1195 = vmatprep.subr.mxu1 %v1385_v20 }
 0x149   : > { %1196 = vmatpush3.msra.mxu1 %v843_v53 }
 0x14a   : > { %1197 = vmatprep.subr.mxu1 %v1385_v20 }
 0x14b   : > { %1198 = vmatpush3.msra.mxu1 %v842_v54 }
 0x14c   : > { %1199 = vmatprep.subr.mxu1 %v1385_v20 }
 0x14d   : > { %1200 = vmatpush3.msra.mxu1 %v841_v55 }
 0x14e   : > { %1201 = vmatprep.subr.mxu1 %v1385_v20 }
 0x14f   : > { %1202 = vmatpush3.msra.mxu1 %v840_v56 }
 0x150   : > { %1203 = vmatprep.subr.mxu1 %v1385_v20 }
 0x151   : > { %1204 = vmatpush3.msra.mxu1 %v839_v57 }
 0x152   : > { %1205 = vmatprep.subr.mxu1 %v1385_v20 }
 0x153   : > { %1206 = vmatpush3.msra.mxu1 %v838_v58 }
 0x154   : > { %1207 = vmatprep.subr.mxu1 %v1385_v20 }
 0x155   : > { %1208 = vmatpush3.msra.mxu1 %v837_v59 }
 0x156   : > { %1209 = vmatprep.subr.mxu1 %v1385_v20 }
 0x157   : > { %1210 = vmatpush3.msra.mxu1 %v836_v60 }
 0x158   : > { %1211 = vmatprep.subr.mxu1 %v1385_v20 }
 0x159   : > { %1212 = vmatpush3.msra.mxu1 %v835_v61 }
 0x15a   : > { %1213 = vmatprep.subr.mxu1 %v1385_v20 }
 0x15b   : > { %1214 = vmatpush3.msra.mxu1 %v834_v62 }
 0x15c   : > { %1215 = vmatprep.subr.mxu1 %v1385_v20 }
 0x15d   : > { %1216 = vmatpush3.msra.mxu1 %v833_v63 }
 0x15e   : > { %1217 = vmatprep.subr.mxu1 %v1385_v20 }
 0x15f   : > { %1218 = vmatpush3.msra.mxu1 %v832_v0 }
 0x160   : > { %1219 = vmatprep.subr.mxu1 %v1385_v20  ;;  %v847_v20 = vld [vmem:[%s1752_s6] sm:$0x1] }
 0x161   : > { %1220 = vmatpush3.msra.mxu1 %v831_v1 }
 0x202   : > { %v823_v3 = vpop.f32.mrf.mxu1 }
 0x203   : > { %v824_v4 = vadd.f32 %v823_v3, %v756_v2 }
 0x204   : > { %v1188_v5 = vpop.f32.mrf.mxu1 }
 0x205   : > { %v827_v6 = vmul.f32 0.5, %v824_v4 }
 0x207   : > { %1301 = vtanh.f32 %v827_v6 }
 0x214   : > { %v1302_v7 = vpop.eup %1301 }
 0x215   : > { %v829_v8 = vadd.f32 1.0, %v1302_v7 }
 0x217   : > { %v830_v9 = vmul.f32 0.5, %v829_v8 }
 0x219   : > { %1222 = vmatmul.mubr.f32.vlgmr.msra.gmra.mxu1 %v830_v9 }
 0x2d9   : > { %v914_v10 = vpop.f32.mrf.mxu1 }
 0x2da   : > { %v915_v11 = vadd.f32 %v914_v10, %v847_v20 }
 0x2db   : > { %v1223_v12 = vpop.f32.mrf.mxu1 }
 0x2dc   : > { %v918_v13 = vmul.f32 0.5, %v915_v11 }
 0x2de   : > { %1303 = vtanh.f32 %v918_v13 }
 0x2eb   : > { %v1304_v14 = vpop.eup %1303 }
 0x2ec   : > { %v920_v15 = vadd.f32 1.0, %v1304_v14 }
 0x2ee   : > { %v921_v16 = vmul.f32 0.5, %v920_v15 }
 0x2f0   : > { %v1058_v17 = vadd.f32 -0.5, %v921_v16 }
 0x2f2   : > { %v923_v18 = vmul.f32 2.0, %v1058_v17 }
 0x2f4   : > { %v924_v19 = vmul.f32 %v923_v18, %v923_v18 }
 0x2f6   : > { %v926_v21 = vsel %vm925_vm3, %v924_v19, 0.0 }
 0x2f7   : > { %927 = vadd.xlane.f32.xlu0 %v926_v21 }
 0x380   : > { %v928_v22 = vpop.xlane.xlu0 %927 }
 0x381   : > { %v929_v23 = vmax.f32 %v928_v22, 1e-24 }
 0x383   : > { %1305 = vrsqrt.f32 %v929_v23 }
 0x390   : > { %v1306_v24 = vpop.eup %1305 }
 0x391   : > { %v931_v25 = vmul.f32 %v1306_v24, %v923_v18 }
 0x393   : > { %932 = vst [vmem:[%s293_s20] sm:$0x1] %v931_v25 }
 0x394   : > { %1320 = shalt.err (!%p1317_p5)
}
 0x395   : > { %s1321_s16 = scalar_lea.hbm %s944_s30, 16  ;;  %s1325_s19 = scalar_lea.hbm %s1753_s7, 32 }
 0x396   : > { %p1322_p6 = scmp.ne.s32.totalorder %s944_s30, %s1321_s16  ;;  %p1326_p10 = scmp.lt.s32.totalorder %s944_s30, %s1753_s7 }
 0x397   : > { %p1327_p11 = scmp.lt.s32.totalorder %s1325_s19, %s1321_s16 }
 0x398   : > { %p1323_p7 = pnand %p1322_p6, %p1468_p4 }
 0x399   : > { %p1328_p12 = por %p1327_p11, %p1326_p10 }
 0x39a   : > { %p1324_p9 = pneg %p1323_p7 }
 0x39c   : > { %p1329_p13 = pnand %p1328_p12, %p1324_p9 }
 0x39e   : > { %1332 = shalt.err (!%p1329_p13)
}
 0x39f   : > { %1225 = dma.vmem_to_hbm [thread:$0]  (%p1468_p4), %s947_s21, 16, %s944_s30, %s934_s8  }
 0x3a0 PF: > { %p1231_p0 = scmp.ge.s32.totalorder %s1383_s29, 2  ;;  %s958_s23 = sand.u32 1, %s1363_s24  }
 0x3a1   : > { %s959_s10 = scalar_lea.sflag [#allocation4], %s958_s23 }
 0x3a2   : > { %p1228_p1 = pnand %p1231_p0, %p1475_p8 }
 0x3a4   : > { %p1229_p2 = pneg %p1228_p1 }
 0x3a6   : > { %1358 = dma.done.wait (%p1229_p2), %s959_s10, 16  }
 0x3a7   : > { %1360 = vsyncadd (%p1229_p2), %s959_s10, 4294967280  ;;  %s20_s29 = sadd.s32 1, %s1383_s29   ;;  %s1756_s24 = smov %s1367_s25 }
 0x3a8   : > { %p17_p3 = scmp.ge.s32.totalorder %s20_s29, 4   ;;  %s1757_s25 = smov %s1371_s26 }
 0x3a9   : > { %s1758_s26 = smov %s1481_s14  ;;  %s1759_s27 = smov %s1379_s28 }
 0x3aa   : > { %s1760_s28 = smov %s1762_s9  ;;  %19 = sbr.rel (!%p17_p3) target bundleno = 4 (0x4), region = 91 }
 0x3af   :  { %963 = vsyncpa [#allocation4], 1 }
 0x3b0   :  { %965 = vsyncpa [#allocation4 + $0x1], 1 }

</bundles_post_ra>
